<compile_context>
chip_gen: v6e
topology: v6e:2x2x1
jax: 0.10.0
libtpu: 0.0.40
codegen_flags: <defaults>
</compile_context>

<pallas_src>
import jax
import jax.numpy as jnp
from jax.experimental import pallas as pl
from jax.experimental.pallas import tpu as pltpu

LANE = 128


def _round_up(x, m):
    return (x + m - 1) // m * m


# ----------------------------------------------------------------------------
# Slab layout: all matmul weights/biases stacked along sublanes, lane width
# 128, every block start 8-sublane aligned (static slices stay tile-aligned).
# ----------------------------------------------------------------------------
def _slab_layout(d_model, c_img, fusion_dim):
    lane_w = max(_round_up(fusion_dim, LANE), _round_up(d_model, LANE))
    off_wt = 0                                   # Wt' : (d_model, lane_w)
    off_wi = off_wt + _round_up(d_model, 8)      # Wi' : (c_img, lane_w)
    off_b1 = off_wi + _round_up(c_img, 8)        # b'  : (1, lane_w)
    off_w2 = off_b1 + 8                          # W2  : (lane_w, lane_w)
    off_b2 = off_w2 + lane_w                     # b2  : (1, lane_w)
    rows = off_b2 + 8
    return dict(lane_w=lane_w, off_wt=off_wt, off_wi=off_wi, off_b1=off_b1,
                off_w2=off_w2, off_b2=off_b2, rows=rows)


# ----------------------------------------------------------------------------
# Fused kernel:
#   img_sum = GSP(ReLU(pointwise_conv(image) + b_conv))    (VPU FMAs, lane=HW)
#   h       = relu(text @ Wt' + img_sum @ Wi' + b')        (folded projections,
#                                                            1/HW inside Wi')
#   out     = h @ W2 + b2
# ----------------------------------------------------------------------------
def _make_kernel(c_in, c_img, d_model, lay):
    off_wt, off_wi = lay["off_wt"], lay["off_wi"]
    off_b1, off_w2, off_b2 = lay["off_b1"], lay["off_w2"], lay["off_b2"]
    lane_w = lay["lane_w"]

    def kernel(img_ref, text_ref, conv_ref, slab_ref, out_ref):
        # ---- simplified image encoder: 1x1 conv -> ReLU -> global sum pool
        img = img_ref[...]                                  # (B, C_in, HW)
        acc = conv_ref[0] * img[:, 0:1, :]                  # (C_out,1)*(B,1,HW)
        for c in range(1, c_in):                            # static unroll, VPU
            acc = acc + conv_ref[c] * img[:, c:c + 1, :]
        acc = jnp.maximum(acc + conv_ref[c_in], 0.0)        # + bias row, ReLU
        img_sum = jnp.sum(acc, axis=2)                      # (B, C_out), XLU

        # ---- static, sublane-aligned slices out of the packed weight slab
        wt = slab_ref[off_wt:off_wt + d_model, :]
        wi = slab_ref[off_wi:off_wi + c_img, :]
        b1 = slab_ref[off_b1:off_b1 + 1, :]
        w2 = slab_ref[off_w2:off_w2 + lane_w, :]
        b2 = slab_ref[off_b2:off_b2 + 1, :]

        # ---- folded projections + fusion MLP: 3 MXU matmuls (2 independent)
        h = jnp.maximum(
            jnp.dot(text_ref[...], wt, preferred_element_type=jnp.float32)
            + jnp.dot(img_sum, wi, preferred_element_type=jnp.float32)
            + b1, 0.0)
        out_ref[...] = (jnp.dot(h, w2, preferred_element_type=jnp.float32) + b2)

    return kernel


def multimodal_fusion(text_features, image_nchw, kparams, d_model, fusion_dim,
                      image_encoder_dim):
    """Full forward pass. image_nchw is PyTorch-style NCHW; no transpose needed."""
    B, C_in, H, W = image_nchw.shape
    img = image_nchw.reshape(B, C_in, H * W)   # contiguous reshape only
    lay = _slab_layout(d_model, image_encoder_dim, fusion_dim)
    kernel = _make_kernel(C_in, image_encoder_dim, d_model, lay)

    out_padded = pl.pallas_call(
        kernel,
        out_shape=jax.ShapeDtypeStruct((B, lay["lane_w"]), jnp.float32),
        # Everything is tiny -> single step, whole arrays resident in VMEM.
        # Real footprint < 1 MiB; 4 MiB leaves plenty of headroom without
        # squeezing neighbouring fusions (v7x: 64 MiB physical per TC).
        compiler_params=pltpu.CompilerParams(vmem_limit_bytes=4 * 1024 * 1024),
    )(img, text_features, kparams["conv"], kparams["slab"])
    return out_padded[:, :d_model]


# ----------------------------------------------------------------------------
# Parameters
# ----------------------------------------------------------------------------
def init_params(key, d_model, fusion_dim, image_encoder_dim, c_in):
    """Logical (PyTorch-layout-equivalent) parameters."""
    ks = jax.random.split(key, 12)
    s = 0.02
    return {
        # simplified image backbone (see TODO(synk) above)
        "w_conv": s * jax.random.normal(ks[0], (c_in, image_encoder_dim), jnp.float32),
        "b_conv": s * jax.random.normal(ks[1], (1, image_encoder_dim), jnp.float32),
        # text_projection: Linear(d_model, fusion_dim)
        "wt": s * jax.random.normal(ks[2], (d_model, fusion_dim), jnp.float32),
        "bt": s * jax.random.normal(ks[3], (1, fusion_dim), jnp.float32),
        # image_projection: Linear(image_encoder_dim, fusion_dim)
        "wi": s * jax.random.normal(ks[4], (image_encoder_dim, fusion_dim), jnp.float32),
        "bi": s * jax.random.normal(ks[5], (1, fusion_dim), jnp.float32),
        # fusion_layer[0]: Linear(2*fusion_dim, fusion_dim), split into halves
        "w1_text": s * jax.random.normal(ks[6], (fusion_dim, fusion_dim), jnp.float32),
        "w1_img": s * jax.random.normal(ks[7], (fusion_dim, fusion_dim), jnp.float32),
        "b1": s * jax.random.normal(ks[8], (1, fusion_dim), jnp.float32),
        # fusion_layer[2]: Linear(fusion_dim, d_model)
        "w2": s * jax.random.normal(ks[9], (fusion_dim, d_model), jnp.float32),
        "b2": s * jax.random.normal(ks[10], (1, d_model), jnp.float32),
    }


def prepare_params(p, d_model, fusion_dim, image_encoder_dim, c_in, hw):
    """One-time kernel-layout prep.

    * Folds both projection layers into the first fusion layer:
        Wt' = wt @ w1_text, Wi' = wi @ w1_img,
        b'  = bt @ w1_text + bi @ w1_img + b1      (exact with zero padding)
    * Folds the 1/HW of the global average pool into Wi' (ReLU precedes the
      pool, so the scale commutes exactly) -> kernel only sum-pools.
    * Packs everything into two slabs (conv params + lane-dense MLP slab).
    """
    lay = _slab_layout(d_model, image_encoder_dim, fusion_dim)
    lane_w = lay["lane_w"]

    wt_f = p["wt"] @ p["w1_text"]                              # (d_model, F)
    wi_f = (p["wi"] @ p["w1_img"]) * (1.0 / float(hw))         # (C_img, F)
    b1_f = p["bt"] @ p["w1_text"] + p["bi"] @ p["w1_img"] + p["b1"]   # (1, F)

    slab = jnp.zeros((lay["rows"], lane_w), jnp.float32)
    slab = slab.at[lay["off_wt"]:lay["off_wt"] + d_model, :fusion_dim].set(wt_f)
    slab = slab.at[lay["off_wi"]:lay["off_wi"] + image_encoder_dim,
                   :fusion_dim].set(wi_f)
    slab = slab.at[lay["off_b1"]:lay["off_b1"] + 1, :fusion_dim].set(b1_f)
    slab = slab.at[lay["off_w2"]:lay["off_w2"] + fusion_dim, :d_model].set(p["w2"])
    slab = slab.at[lay["off_b2"]:lay["off_b2"] + 1, :d_model].set(p["b2"])

    # Conv slab: (C_in + 1, C_out, 1); row c = per-channel weight column,
    # row C_in = bias.  Indexed in-kernel as conv_ref[c] -> (C_out, 1), so no
    # per-channel lane extract / lane broadcast through the XLU is needed.
    conv = jnp.concatenate([p["w_conv"], p["b_conv"]], axis=0)[:, :, None]
    return {"conv": conv.astype(jnp.float32), "slab": slab}


def reference_forward(text, image_nchw, p):
    """Pure-JAX reference (unfolded, unpadded logical params)."""
    B, C, H, W = image_nchw.shape
    img = jnp.transpose(image_nchw, (0, 2, 3, 1)).reshape(B, H * W, C)
    y = jnp.maximum(jnp.einsum("bpc,co->bpo", img, p["w_conv"]) + p["b_conv"], 0.0)
    img_feat = jnp.mean(y, axis=1)
    tproj = text @ p["wt"] + p["bt"]
    iproj = img_feat @ p["wi"] + p["bi"]
    fused = jnp.concatenate([tproj, iproj], axis=-1)
    w1 = jnp.concatenate([p["w1_text"], p["w1_img"]], axis=0)
    h = jnp.maximum(fused @ w1 + p["b1"], 0.0)
    return h @ p["w2"] + p["b2"]


if __name__ == "__main__":
    # small config: d_model=32, fusion_dim=16, image_encoder_dim=32
    B, d_model, fusion_dim, image_encoder_dim = 2, 32, 16, 32
    C_in, H, W = 3, 16, 16

    key = jax.random.PRNGKey(0)
    k_text, k_img, k_params = jax.random.split(key, 3)

    text_features = jax.random.normal(k_text, (B, d_model), jnp.float32)
    image = jax.random.normal(k_img, (B, C_in, H, W), jnp.float32)   # NCHW
    params = init_params(k_params, d_model, fusion_dim, image_encoder_dim, C_in)
    kparams = prepare_params(params, d_model, fusion_dim, image_encoder_dim,
                             C_in, H * W)                             # one-time prep

    out = multimodal_fusion(text_features, image, kparams, d_model, fusion_dim,
                            image_encoder_dim)
    out = jax.block_until_ready(out)

    ref = reference_forward(text_features, image, params)
    assert out.shape == (B, d_model), out.shape
    assert jnp.allclose(out, ref, atol=1e-5, rtol=1e-5), "mismatch vs reference"

    print("KERNEL_OK")
</pallas_src>

<mosaic_0001>
module attributes {stable_mosaic.version = 11 : i64} {
  func.func @kernel(%arg0: memref<2x3x256xf32, #tpu.memory_space<vmem>>, %arg1: memref<2x32xf32, #tpu.memory_space<vmem>>, %arg2: memref<4x32x1xf32, #tpu.memory_space<vmem>>, %arg3: memref<208x128xf32, #tpu.memory_space<vmem>>, %arg4: memref<2x128xf32, #tpu.memory_space<vmem>>) attributes {dimension_semantics = [], scalar_prefetch = 0 : i64, scratch_operands = 0 : i64, tpu.core_type = #tpu.core_type<tc>} {
    %c0 = arith.constant 0 : index
    %c0_0 = arith.constant 0 : index
    %c0_1 = arith.constant 0 : index
    %0 = vector.load %arg0[%c0, %c0_0, %c0_1] : memref<2x3x256xf32, #tpu.memory_space<vmem>>, vector<2x3x256xf32>
    %c0_2 = arith.constant 0 : index
    %c0_3 = arith.constant 0 : index
    %c0_4 = arith.constant 0 : index
    %1 = vector.load %arg2[%c0_2, %c0_3, %c0_4] : memref<4x32x1xf32, #tpu.memory_space<vmem>>, vector<1x32x1xf32>
    %2 = vector.shape_cast %1 : vector<1x32x1xf32> to vector<32x1xf32>
    %3 = vector.extract_strided_slice %0 {offsets = [0, 0, 0], sizes = [2, 1, 256], strides = [1, 1, 1]} : vector<2x3x256xf32> to vector<2x1x256xf32>
    %4 = vector.shape_cast %2 : vector<32x1xf32> to vector<1x32x1xf32>
    %5 = vector.broadcast %4 : vector<1x32x1xf32> to vector<2x32x256xf32>
    %6 = vector.broadcast %3 : vector<2x1x256xf32> to vector<2x32x256xf32>
    %7 = arith.mulf %5, %6 : vector<2x32x256xf32>
    %c1 = arith.constant 1 : index
    %c0_5 = arith.constant 0 : index
    %c0_6 = arith.constant 0 : index
    %8 = vector.load %arg2[%c1, %c0_5, %c0_6] : memref<4x32x1xf32, #tpu.memory_space<vmem>>, vector<1x32x1xf32>
    %9 = vector.shape_cast %8 : vector<1x32x1xf32> to vector<32x1xf32>
    %10 = vector.extract_strided_slice %0 {offsets = [0, 1, 0], sizes = [2, 1, 256], strides = [1, 1, 1]} : vector<2x3x256xf32> to vector<2x1x256xf32>
    %11 = vector.shape_cast %9 : vector<32x1xf32> to vector<1x32x1xf32>
    %12 = vector.broadcast %11 : vector<1x32x1xf32> to vector<2x32x256xf32>
    %13 = vector.broadcast %10 : vector<2x1x256xf32> to vector<2x32x256xf32>
    %14 = arith.mulf %12, %13 : vector<2x32x256xf32>
    %15 = arith.addf %7, %14 : vector<2x32x256xf32>
    %c2 = arith.constant 2 : index
    %c0_7 = arith.constant 0 : index
    %c0_8 = arith.constant 0 : index
    %16 = vector.load %arg2[%c2, %c0_7, %c0_8] : memref<4x32x1xf32, #tpu.memory_space<vmem>>, vector<1x32x1xf32>
    %17 = vector.shape_cast %16 : vector<1x32x1xf32> to vector<32x1xf32>
    %18 = vector.extract_strided_slice %0 {offsets = [0, 2, 0], sizes = [2, 1, 256], strides = [1, 1, 1]} : vector<2x3x256xf32> to vector<2x1x256xf32>
    %19 = vector.shape_cast %17 : vector<32x1xf32> to vector<1x32x1xf32>
    %20 = vector.broadcast %19 : vector<1x32x1xf32> to vector<2x32x256xf32>
    %21 = vector.broadcast %18 : vector<2x1x256xf32> to vector<2x32x256xf32>
    %22 = arith.mulf %20, %21 : vector<2x32x256xf32>
    %23 = arith.addf %15, %22 : vector<2x32x256xf32>
    %c3 = arith.constant 3 : index
    %c0_9 = arith.constant 0 : index
    %c0_10 = arith.constant 0 : index
    %24 = vector.load %arg2[%c3, %c0_9, %c0_10] : memref<4x32x1xf32, #tpu.memory_space<vmem>>, vector<1x32x1xf32>
    %25 = vector.shape_cast %24 : vector<1x32x1xf32> to vector<32x1xf32>
    %26 = vector.shape_cast %25 : vector<32x1xf32> to vector<1x32x1xf32>
    %27 = vector.broadcast %26 : vector<1x32x1xf32> to vector<2x32x256xf32>
    %28 = arith.addf %23, %27 : vector<2x32x256xf32>
    %cst = arith.constant 0.000000e+00 : f32
    %29 = vector.broadcast %cst : f32 to vector<2x32x256xf32>
    %30 = arith.maximumf %28, %29 : vector<2x32x256xf32>
    %cst_11 = arith.constant dense<0.000000e+00> : vector<2x32xf32>
    %31 = vector.multi_reduction <add>, %30, %cst_11 [2] : vector<2x32x256xf32> to vector<2x32xf32>
    %c0_12 = arith.constant 0 : index
    %c0_13 = arith.constant 0 : index
    %32 = vector.load %arg3[%c0_12, %c0_13] : memref<208x128xf32, #tpu.memory_space<vmem>>, vector<32x128xf32>
    %c32 = arith.constant 32 : index
    %c0_14 = arith.constant 0 : index
    %33 = vector.load %arg3[%c32, %c0_14] : memref<208x128xf32, #tpu.memory_space<vmem>>, vector<32x128xf32>
    %c64 = arith.constant 64 : index
    %c0_15 = arith.constant 0 : index
    %34 = vector.load %arg3[%c64, %c0_15] : memref<208x128xf32, #tpu.memory_space<vmem>>, vector<1x128xf32>
    %c72 = arith.constant 72 : index
    %c0_16 = arith.constant 0 : index
    %35 = vector.load %arg3[%c72, %c0_16] : memref<208x128xf32, #tpu.memory_space<vmem>>, vector<128x128xf32>
    %c200 = arith.constant 200 : index
    %c0_17 = arith.constant 0 : index
    %36 = vector.load %arg3[%c200, %c0_17] : memref<208x128xf32, #tpu.memory_space<vmem>>, vector<1x128xf32>
    %c0_18 = arith.constant 0 : index
    %c0_19 = arith.constant 0 : index
    %37 = vector.load %arg1[%c0_18, %c0_19] : memref<2x32xf32, #tpu.memory_space<vmem>>, vector<2x32xf32>
    %cst_20 = arith.constant dense<0.000000e+00> : vector<2x128xf32>
    %38 = tpu.matmul %37, %32, %cst_20 {dimension_numbers = #tpu.dot_dimension_numbers<[1], [0], [0], [1], [0, 0, 1, 1], [], []>} : vector<2x32xf32>, vector<32x128xf32>, vector<2x128xf32> -> vector<2x128xf32>
    %cst_21 = arith.constant dense<0.000000e+00> : vector<2x128xf32>
    %39 = tpu.matmul %31, %33, %cst_21 {dimension_numbers = #tpu.dot_dimension_numbers<[1], [0], [0], [1], [0, 0, 1, 1], [], []>} : vector<2x32xf32>, vector<32x128xf32>, vector<2x128xf32> -> vector<2x128xf32>
    %40 = arith.addf %38, %39 : vector<2x128xf32>
    %41 = vector.broadcast %34 : vector<1x128xf32> to vector<2x128xf32>
    %42 = arith.addf %40, %41 : vector<2x128xf32>
    %cst_22 = arith.constant 0.000000e+00 : f32
    %43 = vector.broadcast %cst_22 : f32 to vector<2x128xf32>
    %44 = arith.maximumf %42, %43 : vector<2x128xf32>
    %cst_23 = arith.constant dense<0.000000e+00> : vector<2x128xf32>
    %45 = tpu.matmul %44, %35, %cst_23 {dimension_numbers = #tpu.dot_dimension_numbers<[1], [0], [0], [1], [0, 0, 1, 1], [], []>} : vector<2x128xf32>, vector<128x128xf32>, vector<2x128xf32> -> vector<2x128xf32>
    %46 = vector.broadcast %36 : vector<1x128xf32> to vector<2x128xf32>
    %47 = arith.addf %45, %46 : vector<2x128xf32>
    %c0_24 = arith.constant 0 : index
    %c0_25 = arith.constant 0 : index
    %48 = vector.load %arg4[%c0_24, %c0_25] : memref<2x128xf32, #tpu.memory_space<vmem>>, vector<2x128xf32>
    tpu.vector_store %arg4[%c0_24, %c0_25], %47 {strides = array<i32>} : memref<2x128xf32, #tpu.memory_space<vmem>>, vector<2x128xf32>,
    return
  }
}

</mosaic_0001>

<bundles_post_ra>
// kernel: tpu_custom_call.1
= control target key start
LH: loop header
LB: loop body
LE: loop exit
PB: predicated region body
PF: predicated region fallthrough
CT: control target
= control target key end

     0   :  { %9 = vsyncpa [#allocation3], 0  ;;  %s1013_s0 = inlined_call_operand.vmem [shape: f32[2,3,256], index: 0, kind: input, shape index: {}]   ;;  %s1014_s1 = inlined_call_operand.vmem [shape: f32[2,32], index: 1, kind: input, shape index: {}]   ;;  %s1015_s2 = inlined_call_operand.vmem [shape: f32[4,32,1], index: 2, kind: input, shape index: {}]   ;;  %s1016_s3 = inlined_call_operand.hbm [shape: f32[208,128], index: 3, kind: input, shape index: {}]   ;;  %s1017_s4 = inlined_call_operand.hbm [shape: f32[2,128], index: 4, kind: output, shape index: {}]  }
   0x1   :  { %10 = vsyncpa [#allocation4], 0  ;;  %s857_s15 = smov [#allocation2]  }
   0x2   :  { %s22_s16 = sshll.u32 %s857_s15, 4  ;;  %s23_s16 = int_to_ptr.vmem [resolvable:$true] %s22_s16 }
   0x3   :  { %s821_s17 = scalar_lea.vmem %s23_s16, 3328  ;;  %p826_p1 = scmp.lt.s32.totalorder %s23_s16, %s23_s16 }
   0x4   :  { %p822_p0 = scmp.ne.s32.totalorder %s23_s16, %s821_s17  ;;  %p827_p2 = scmp.lt.s32.totalorder %s821_s17, %s821_s17 }
   0x6   :  { %p828_p3 = por %p827_p2, %p826_p1 }
   0x8   :  { %p829_p4 = pnand %p828_p3, %p822_p0 }
   0xa   :  { %832 = shalt.err (!%p829_p4)
}
   0xb   :  { %s858_s18 = smov 128   ;;  %s859_s19 = smov 8  }
   0xc   :  { %28 = dma.hbm_to_vmem [thread:$0]  %s1016_s3, 3328, %s23_s16, [#allocation3], %s858_s18, %s858_s18, %s859_s19  }
   0xd   :  { %853 = dma.done.wait [#allocation3], 3328  }
   0xe   :  { %854 = vsyncadd [#allocation3], 4294963968  ;;  %v860_v0 = vmov 0   ;;  %v704_v1 = vld [vmem:[%s1015_s2 + $0x20] sm:$0xff]  ;;  %v705_v3 = vld [vmem:[%s1015_s2 + $0x28] sm:$0xff]  ;;  %v60_v17 = vlaneseq  ;;  %vm862_vm0 = vmmov 0  }
   0xf   :  { %812 = vset.pattern.permute.xlu1 %v860_v0  ;;  %811 = vset.pattern.permute.xlu0 %v860_v0  ;;  %v34_v2 = vld [vmem:[%s1015_s2] sm:$0xff]  ;;  %v35_v4 = vld [vmem:[%s1015_s2 + $0x8] sm:$0xff]  ;;  %v706_v5 = vld [vmem:[%s1015_s2 + $0x30] sm:$0xff]  ;;  %vm425_vm1 = vcmask 130112   ;;  %vm432_vm2 = vcmask 195712   ;;  %vm439_vm3 = vcmask 261312  }
  0x10   :  { %119 = vperm.xlu1 %812, %v704_v1   ;;  %40 = vperm.xlu0 %811, %v34_v2   ;;  %v36_v6 = vld [vmem:[%s1015_s2 + $0x10] sm:$0xff]  ;;  %v707_v7 = vld [vmem:[%s1015_s2 + $0x38] sm:$0xff]  ;;  %v709_v9 = vld [vmem:[%s1015_s2 + $0x48] sm:$0xff]  ;;  %v941_v18 = vshrl.u32 %v60_v17, 7  ;;  %vm460_vm4 = vcmask 1041409   ;;  %vm462_vm5 = vcmask 261120  }
  0x11   :  { %v37_v8 = vld [vmem:[%s1015_s2 + $0x18] sm:$0xff]  ;;  %v708_v10 = vld [vmem:[%s1015_s2 + $0x40] sm:$0xff]  ;;  %v710_v12 = vld [vmem:[%s1015_s2 + $0x50] sm:$0xff] }
  0x12   :  { %v711_v11 = vld [vmem:[%s1015_s2 + $0x58] sm:$0xff]  ;;  %v713_v13 = vld [vmem:[%s1015_s2 + $0x68] sm:$0xff]  ;;  %v712_v14 = vld [vmem:[%s1015_s2 + $0x60] sm:$0xff]  ;;  %v139_v19 = vsub.s32 1, %v941_v18  ;;  %v143_v20 = vsub.s32 5, %v941_v18  ;;  %v62_v23 = vsub.s32 0, %v941_v18 }
  0x13   :  { %v715_v15 = vld [vmem:[%s1015_s2 + $0x78] sm:$0xff]  ;;  %v714_v16 = vld [vmem:[%s1015_s2 + $0x70] sm:$0xff]  ;;  %v32_v21 = vld [vmem:[%s1013_s0] sm:$0x77]  ;;  %v66_v24 = vsub.s32 4, %v941_v18  ;;  %v232_v35 = vsub.s32 2, %v941_v18 }
  0x14   :  { %124 = vperm.xlu1 %812, %v705_v3   ;;  %45 = vperm.xlu0 %811, %v35_v4   ;;  %v33_v22 = vld [vmem:[%s1013_s0 + $0x8] sm:$0x77]  ;;  %v140_v25 = vrot.slane %v32_v21, %v139_v19  ;;  %v144_v26 = vrot.slane %v32_v21, %v143_v20  ;;  %v63_v29 = vrot.slane %v32_v21, %v62_v23  ;;  %v236_v36 = vsub.s32 6, %v941_v18 }
  0x15   :  { %v148_v27 = vrot.slane %v33_v22, %v139_v19  ;;  %v152_v28 = vrot.slane %v33_v22, %v143_v20  ;;  %v67_v30 = vrot.slane %v32_v21, %v66_v24  ;;  %v71_v31 = vrot.slane %v33_v22, %v62_v23 }
  0x16   :  { %v75_v32 = vrot.slane %v33_v22, %v66_v24  ;;  %v160_v37 = vrot.slane %v140_v25, %v139_v19  ;;  %v164_v38 = vrot.slane %v144_v26, %v139_v19  ;;  %v83_v41 = vrot.slane %v63_v29, %v62_v23 }
  0x17   :  { %v168_v39 = vrot.slane %v148_v27, %v139_v19  ;;  %v172_v40 = vrot.slane %v152_v28, %v139_v19  ;;  %v87_v42 = vrot.slane %v67_v30, %v62_v23  ;;  %v91_v43 = vrot.slane %v71_v31, %v62_v23 }
  0x18   :  { %129 = vperm.xlu1 %812, %v706_v5   ;;  %50 = vperm.xlu0 %811, %v36_v6   ;;  %v95_v44 = vrot.slane %v75_v32, %v62_v23  ;;  %v233_v47 = vrot.slane %v32_v21, %v232_v35  ;;  %v237_v48 = vrot.slane %v32_v21, %v236_v36 }
  0x19   :  { %v241_v49 = vrot.slane %v33_v22, %v232_v35  ;;  %v245_v50 = vrot.slane %v33_v22, %v236_v36 }
  0x1a   :  { %v253_v5 = vrot.slane %v233_v47, %v232_v35  ;;  %v257_v6 = vrot.slane %v237_v48, %v232_v35 }
  0x1c   :  { %134 = vperm.xlu1 %812, %v707_v7   ;;  %55 = vperm.xlu0 %811, %v37_v8   ;;  %v955_v7 = vrot.slane %v241_v49, %v232_v35  ;;  %v957_v8 = vrot.slane %v245_v50, %v232_v35 }
  0x20   :  { %217 = vperm.xlu1 %812, %v709_v9   ;;  %212 = vperm.xlu0 %811, %v708_v10  }
  0x24   :  { %227 = vperm.xlu1 %812, %v711_v11   ;;  %222 = vperm.xlu0 %811, %v710_v12  }
  0x28   :  { %310 = vperm.xlu1 %812, %v713_v13   ;;  %305 = vperm.xlu0 %811, %v712_v14  }
  0x2c   :  { %320 = vperm.xlu1 %812, %v715_v15   ;;  %315 = vperm.xlu0 %811, %v714_v16  }
  0x8b   :  { %v120_v33 = vpop.permute.xlu1 %119  ;;  %v41_v34 = vpop.permute.xlu0 %40 }
  0x8c   :  { %v173_v51 = vmul.f32 %v160_v37, %v120_v33  ;;  %v174_v52 = vmul.f32 %v164_v38, %v120_v33  ;;  %v181_v53 = vmul.f32 %v168_v39, %v120_v33  ;;  %v182_v54 = vmul.f32 %v172_v40, %v120_v33 }
  0x8d   :  { %v96_v55 = vmul.f32 %v83_v41, %v41_v34  ;;  %v97_v56 = vmul.f32 %v87_v42, %v41_v34  ;;  %v104_v57 = vmul.f32 %v91_v43, %v41_v34  ;;  %v105_v58 = vmul.f32 %v95_v44, %v41_v34 }
  0x8f   :  { %v125_v45 = vpop.permute.xlu1 %124  ;;  %v46_v46 = vpop.permute.xlu0 %45  ;;  %v189_v9 = vadd.f32 %v173_v51, %v96_v55  ;;  %v190_v10 = vadd.f32 %v174_v52, %v97_v56  ;;  %v197_v11 = vadd.f32 %v181_v53, %v104_v57  ;;  %v198_v12 = vadd.f32 %v182_v54, %v105_v58 }
  0x90   :  { %v175_v59 = vmul.f32 %v160_v37, %v125_v45  ;;  %v176_v60 = vmul.f32 %v164_v38, %v125_v45  ;;  %v183_v61 = vmul.f32 %v168_v39, %v125_v45  ;;  %v184_v62 = vmul.f32 %v172_v40, %v125_v45 }
  0x91   :  { %v98_v63 = vmul.f32 %v83_v41, %v46_v46  ;;  %v99_v0 = vmul.f32 %v87_v42, %v46_v46  ;;  %v106_v1 = vmul.f32 %v91_v43, %v46_v46  ;;  %v107_v2 = vmul.f32 %v95_v44, %v46_v46 }
  0x93   :  { %v130_v3 = vpop.permute.xlu1 %129  ;;  %v51_v4 = vpop.permute.xlu0 %50  ;;  %v191_v13 = vadd.f32 %v175_v59, %v98_v63  ;;  %v192_v14 = vadd.f32 %v176_v60, %v99_v0  ;;  %v199_v15 = vadd.f32 %v183_v61, %v106_v1  ;;  %v200_v16 = vadd.f32 %v184_v62, %v107_v2 }
  0x94   :  { %v177_v21 = vmul.f32 %v160_v37, %v130_v3  ;;  %v178_v22 = vmul.f32 %v164_v38, %v130_v3  ;;  %v100_v23 = vmul.f32 %v83_v41, %v51_v4  ;;  %v101_v24 = vmul.f32 %v87_v42, %v51_v4 }
  0x95   :  { %v185_v25 = vmul.f32 %v168_v39, %v130_v3  ;;  %v186_v26 = vmul.f32 %v172_v40, %v130_v3  ;;  %v108_v27 = vmul.f32 %v91_v43, %v51_v4  ;;  %v109_v28 = vmul.f32 %v95_v44, %v51_v4 }
  0x96   :  { %v193_v47 = vadd.f32 %v177_v21, %v100_v23  ;;  %v194_v48 = vadd.f32 %v178_v22, %v101_v24 }
  0x97   :  { %v135_v19 = vpop.permute.xlu1 %134  ;;  %v56_v20 = vpop.permute.xlu0 %55  ;;  %v201_v51 = vadd.f32 %v185_v25, %v108_v27  ;;  %v202_v52 = vadd.f32 %v186_v26, %v109_v28 }
  0x98   :  { %v179_v29 = vmul.f32 %v160_v37, %v135_v19  ;;  %v180_v30 = vmul.f32 %v164_v38, %v135_v19  ;;  %v187_v31 = vmul.f32 %v168_v39, %v135_v19  ;;  %v188_v32 = vmul.f32 %v172_v40, %v135_v19 }
  0x99   :  { %v102_v33 = vmul.f32 %v83_v41, %v56_v20  ;;  %v103_v34 = vmul.f32 %v87_v42, %v56_v20  ;;  %v110_v35 = vmul.f32 %v91_v43, %v56_v20  ;;  %v111_v36 = vmul.f32 %v95_v44, %v56_v20 }
  0x9b   :  { %v218_v45 = vpop.permute.xlu1 %217  ;;  %v213_v46 = vpop.permute.xlu0 %212  ;;  %v195_v41 = vadd.f32 %v179_v29, %v102_v33  ;;  %v196_v42 = vadd.f32 %v180_v30, %v103_v34  ;;  %v203_v43 = vadd.f32 %v187_v31, %v110_v35  ;;  %v963_v44 = vadd.f32 %v188_v32, %v111_v36 }
  0x9c   :  { %v268_v49 = vmul.f32 %v253_v5, %v218_v45  ;;  %v269_v50 = vmul.f32 %v257_v6, %v218_v45  ;;  %v276_v53 = vmul.f32 %v955_v7, %v218_v45  ;;  %v277_v54 = vmul.f32 %v957_v8, %v218_v45 }
  0x9d   :  { %v266_v37 = vmul.f32 %v253_v5, %v213_v46  ;;  %v267_v38 = vmul.f32 %v257_v6, %v213_v46  ;;  %v274_v39 = vmul.f32 %v955_v7, %v213_v46  ;;  %v275_v40 = vmul.f32 %v957_v8, %v213_v46 }
  0x9e   :  { %v284_v59 = vadd.f32 %v268_v49, %v191_v13  ;;  %v285_v60 = vadd.f32 %v269_v50, %v192_v14  ;;  %v292_v63 = vadd.f32 %v276_v53, %v199_v15  ;;  %v293_v0 = vadd.f32 %v277_v54, %v200_v16 }
  0x9f   :  { %v228_v55 = vpop.permute.xlu1 %227  ;;  %v223_v56 = vpop.permute.xlu0 %222  ;;  %v282_v1 = vadd.f32 %v266_v37, %v189_v9  ;;  %v283_v2 = vadd.f32 %v267_v38, %v190_v10  ;;  %v290_v3 = vadd.f32 %v274_v39, %v197_v11  ;;  %v291_v4 = vadd.f32 %v275_v40, %v198_v12 }
  0xa0   :  { %v272_v57 = vmul.f32 %v253_v5, %v228_v55  ;;  %v273_v58 = vmul.f32 %v257_v6, %v228_v55  ;;  %v270_v61 = vmul.f32 %v253_v5, %v223_v56  ;;  %v271_v62 = vmul.f32 %v257_v6, %v223_v56 }
  0xa1   :  { %v278_v19 = vmul.f32 %v955_v7, %v223_v56  ;;  %v279_v20 = vmul.f32 %v957_v8, %v223_v56  ;;  %v280_v45 = vmul.f32 %v955_v7, %v228_v55  ;;  %v281_v49 = vmul.f32 %v957_v8, %v228_v55 }
  0xa2   :  { %v288_v23 = vadd.f32 %v272_v57, %v195_v41  ;;  %v289_v24 = vadd.f32 %v273_v58, %v196_v42  ;;  %v286_v5 = vadd.f32 %v270_v61, %v193_v47  ;;  %v287_v6 = vadd.f32 %v271_v62, %v194_v48 }
  0xa3   :  { %v311_v21 = vpop.permute.xlu1 %310  ;;  %v306_v22 = vpop.permute.xlu0 %305  ;;  %v294_v48 = vadd.f32 %v278_v19, %v201_v51  ;;  %v295_v54 = vadd.f32 %v279_v20, %v202_v52  ;;  %v296_v58 = vadd.f32 %v280_v45, %v203_v43  ;;  %v297_v7 = vadd.f32 %v281_v49, %v963_v44  ;;  %v386_v43 = vld [vmem:[#allocation2 + $0x38] sm:$0xff]  ;;  %v385_v44 = vld [vmem:[#allocation2 + $0x30] sm:$0xff] }
  0xa4   :  { %v325_v25 = vadd.f32 %v311_v21, %v284_v59  ;;  %v326_v26 = vadd.f32 %v311_v21, %v285_v60  ;;  %v323_v13 = vadd.f32 %v306_v22, %v282_v1  ;;  %v324_v14 = vadd.f32 %v306_v22, %v283_v2  ;;  %v384_v2 = vld [vmem:[#allocation2 + $0x28] sm:$0xff]  ;;  %v402_v19 = vld [vmem:[#allocation2 + $0xb8] sm:$0xff]  ;;  %v401_v20 = vld [vmem:[#allocation2 + $0xb0] sm:$0xff] }
  0xa5   :  { %v331_v15 = vadd.f32 %v306_v22, %v290_v3  ;;  %v332_v16 = vadd.f32 %v306_v22, %v291_v4  ;;  %v333_v31 = vadd.f32 %v311_v21, %v292_v63  ;;  %v334_v32 = vadd.f32 %v311_v21, %v293_v0  ;;  %v383_v3 = vld [vmem:[#allocation2 + $0x20] sm:$0xff]  ;;  %v400_v21 = vld [vmem:[#allocation2 + $0xa8] sm:$0xff] }
  0xa6   :  { %v341_v9 = vmax.f32 %v325_v25, 0.0  ;;  %v342_v10 = vmax.f32 %v326_v26, 0.0  ;;  %v339_v11 = vmax.f32 %v323_v13, 0.0  ;;  %v340_v12 = vmax.f32 %v324_v14, 0.0  ;;  %v403_v4 = vld [vmem:[#allocation2 + $0xc0] sm:$0xff]  ;;  %v396_v25 = vld [vmem:[#allocation2 + $0x88] sm:$0xff] }
  0xa7   :  { %v321_v27 = vpop.permute.xlu1 %320  ;;  %v316_v28 = vpop.permute.xlu0 %315  ;;  %v347_v29 = vmax.f32 %v331_v15, 0.0  ;;  %v348_v30 = vmax.f32 %v332_v16, 0.0  ;;  %v349_v38 = vmax.f32 %v333_v31, 0.0  ;;  %v350_v39 = vmax.f32 %v334_v32, 0.0  ;;  %v399_v22 = vld [vmem:[#allocation2 + $0xa0] sm:$0xff] }
  0xa8   :  { %v358_v33 = vadd.f32 %v342_v10, %v341_v9  ;;  %v355_v34 = vadd.f32 %v340_v12, %v339_v11  ;;  %v327_v35 = vadd.f32 %v316_v28, %v286_v5  ;;  %v328_v36 = vadd.f32 %v316_v28, %v287_v6  ;;  %v395_v26 = vld [vmem:[#allocation2 + $0x80] sm:$0xff] }
  0xa9   :  { %v329_v46 = vadd.f32 %v321_v27, %v288_v23  ;;  %v330_v47 = vadd.f32 %v321_v27, %v289_v24  ;;  %v367_v37 = vadd.f32 %v348_v30, %v347_v29  ;;  %v335_v40 = vadd.f32 %v316_v28, %v294_v48  ;;  %v398_v23 = vld [vmem:[#allocation2 + $0x98] sm:$0xff]  ;;  %v397_v24 = vld [vmem:[#allocation2 + $0x90] sm:$0xff] }
  0xaa   :  { %359 = vadd.xlane.f32.xlu1 %v358_v33  ;;  %356 = vadd.xlane.f32.xlu0 %v355_v34  ;;  %v343_v50 = vmax.f32 %v327_v35, 0.0  ;;  %v344_v53 = vmax.f32 %v328_v36, 0.0  ;;  %v336_v57 = vadd.f32 %v316_v28, %v295_v54  ;;  %v370_v51 = vadd.f32 %v350_v39, %v349_v38  ;;  %v381_v39 = vld [vmem:[#allocation2 + $0x10] sm:$0xff] }
  0xab   :  { %v345_v42 = vmax.f32 %v329_v46, 0.0  ;;  %v346_v56 = vmax.f32 %v330_v47, 0.0  ;;  %v337_v8 = vadd.f32 %v321_v27, %v296_v58  ;;  %v351_v59 = vmax.f32 %v335_v40, 0.0  ;;  %v380_v40 = vld [vmem:[#allocation2 + $0x8] sm:$0xff] }
  0xac   :  { %v361_v41 = vadd.f32 %v344_v53, %v343_v50  ;;  %v352_v60 = vmax.f32 %v336_v57, 0.0  ;;  %v338_v61 = vadd.f32 %v321_v27, %v297_v7  ;;  %v861_v1 = vmov 0.0   ;;  %v393_v57 = vld [vmem:[#allocation2 + $0x70] sm:$0xff]  ;;  %v392_v58 = vld [vmem:[#allocation2 + $0x68] sm:$0xff]  ;;  %v391_v7 = vld [vmem:[#allocation2 + $0x60] sm:$0xff] }
  0xad   :  { %v364_v55 = vadd.f32 %v346_v56, %v345_v42  ;;  %v353_v62 = vmax.f32 %v337_v8, 0.0  ;;  %747 = vmatprep.subr.mxu1 %v861_v1  ;;  %769 = vmatprep.subr.mxu0 %v861_v1  ;;  %v415_v5 = vand.u32 127, %v60_v17  ;;  %v405_v42 = vld [vmem:[%s1014_s1] sm:$0x3]  ;;  %v394_v56 = vld [vmem:[#allocation2 + $0x78] sm:$0xff]  ;;  %v389_v8 = vld [vmem:[#allocation2 + $0x50] sm:$0xff] }
  0xae   :  { %362 = vadd.xlane.f32.xlu1 %v361_v41  ;;  %368 = vadd.xlane.f32.xlu0 %v367_v37  ;;  %v373_v52 = vadd.f32 %v352_v60, %v351_v59  ;;  %v354_v63 = vmax.f32 %v338_v61, 0.0  ;;  %v382_v37 = vld [vmem:[#allocation2 + $0x18] sm:$0xff]  ;;  %v379_v41 = vld [vmem:[#allocation2] sm:$0xff]  ;;  %s863_s1 = smov [#allocation5]  }
  0xaf   :  { %748 = vmatpush3.msra.mxu1 %v386_v43  ;;  %755 = vmatprep.mubr.msk.f32.mxu1 %vm862_vm0, %v861_v1  ;;  %v420_v15 = vadd.s32 4294967288, %v415_v5  ;;  %v427_v16 = vadd.s32 4294967280, %v415_v5  ;;  %v434_v10 = vadd.s32 4294967272, %v415_v5  ;;  %v418_v27 = vsub.s32 %v415_v5, %v941_v18  ;;  %v718_v61 = vld [vmem:[#allocation2 + $0x40] ss:$0 sm:$0xff]  ;;  %s695_s30 = sshll.u32 %s863_s1, 4  ;;  %s696_s30 = int_to_ptr.vmem [resolvable:$true] %s695_s30 }
  0xb0   :  { %v376_v0 = vadd.f32 %v354_v63, %v353_v62  ;;  %749 = vmatprep.subr.mxu1 %v861_v1  ;;  %801 = vmatprep.mubr.msk.f32.mxu0 %vm862_vm0, %v861_v1  ;;  %s833_s5 = scalar_lea.vmem %s696_s30, 32  ;;  %p838_p6 = scmp.lt.s32.totalorder %s696_s30, %s696_s30 }
  0xb1   :  { %750 = vmatpush3.msra.mxu1 %v385_v44  ;;  %770 = vmatpush3.msra.mxu0 %v403_v4  ;;  %v423_v12 = vsub.s32 %v420_v15, %v941_v18  ;;  %v430_v28 = vsub.s32 %v427_v16, %v941_v18  ;;  %v437_v29 = vsub.s32 %v434_v10, %v941_v18  ;;  %v719_v44 = vld [vmem:[#allocation2 + $0xc8] ss:$0 sm:$0xff]  ;;  %p834_p5 = scmp.ne.s32.totalorder %s696_s30, %s833_s5  ;;  %p839_p7 = scmp.lt.s32.totalorder %s833_s5, %s833_s5 }
  0xb2   :  { %365 = vadd.xlane.f32.xlu1 %v364_v55  ;;  %371 = vadd.xlane.f32.xlu0 %v370_v51  ;;  %v390_v51 = vld [vmem:[#allocation2 + $0x58] sm:$0xff]  ;;  %v388_v55 = vld [vmem:[#allocation2 + $0x48] sm:$0xff] }
  0xb3   :  { %751 = vmatprep.subr.mxu1 %v861_v1  ;;  %771 = vmatprep.subr.mxu0 %v861_v1  ;;  %p840_p8 = por %p839_p7, %p838_p6 }
  0xb4   :  { %752 = vmatpush3.msra.mxu1 %v384_v2  ;;  %772 = vmatpush3.msra.mxu0 %v402_v19 }
  0xb5   :  { %753 = vmatprep.subr.mxu1 %v861_v1  ;;  %773 = vmatprep.subr.mxu0 %v861_v1  ;;  %p841_p9 = pnand %p840_p8, %p834_p5 }
  0xb6   :  { %374 = vadd.xlane.f32.xlu0 %v373_v52  ;;  %754 = vmatpush3.msra.mxu1 %v383_v3 }
  0xb7   :  { %758 = vmatprep.subr.mxu1 %v861_v1  ;;  %774 = vmatpush3.msra.mxu0 %v401_v20 }
  0xb8   :  { %775 = vmatprep.subr.mxu0 %v861_v1 }
  0xb9   :  { %776 = vmatpush3.msra.mxu0 %v400_v21 }
  0xba   :  { %377 = vadd.xlane.f32.xlu0 %v376_v0  ;;  %777 = vmatprep.subr.mxu0 %v861_v1 }
  0xbb   :  { %778 = vmatpush3.msra.mxu0 %v399_v22 }
  0xbc   :  { %779 = vmatprep.subr.mxu0 %v861_v1 }
  0xbd   :  { %780 = vmatpush3.msra.mxu0 %v398_v23 }
  0xbe   :  { %781 = vmatprep.subr.mxu0 %v861_v1 }
  0xbf   :  { %782 = vmatpush3.msra.mxu0 %v397_v24 }
  0xc0   :  { %783 = vmatprep.subr.mxu0 %v861_v1 }
  0xc1   :  { %784 = vmatpush3.msra.mxu0 %v396_v25 }
  0xc2   :  { %785 = vmatprep.subr.mxu0 %v861_v1 }
  0xc3   :  { %786 = vmatpush3.msra.mxu0 %v395_v26 }
  0xc4   :  { %787 = vmatprep.subr.mxu0 %v861_v1 }
  0xc5   :  { %788 = vmatpush3.msra.mxu0 %v394_v56 }
  0xc6   :  { %789 = vmatprep.subr.mxu0 %v861_v1 }
  0xc7   :  { %790 = vmatpush3.msra.mxu0 %v393_v57 }
  0xc8   :  { %791 = vmatprep.subr.mxu0 %v861_v1 }
  0xc9   :  { %792 = vmatpush3.msra.mxu0 %v392_v58 }
  0xca   :  { %793 = vmatprep.subr.mxu0 %v861_v1 }
  0xcb   :  { %794 = vmatpush3.msra.mxu0 %v391_v7 }
  0xcc   :  { %795 = vmatprep.subr.mxu0 %v861_v1 }
  0xcd   :  { %796 = vmatpush3.msra.mxu0 %v390_v51 }
  0xce   :  { %797 = vmatprep.subr.mxu0 %v861_v1 }
  0xcf   :  { %798 = vmatpush3.msra.mxu0 %v389_v8 }
  0xd0   :  { %799 = vmatprep.subr.mxu0 %v861_v1 }
  0xd1   :  { %800 = vmatpush3.msra.mxu0 %v388_v55 }
 0x133   :  { %v360_v13 = vpop.xlane.xlu1 %359  ;;  %v357_v14 = vpop.xlane.xlu0 %356 }
 0x134   :  { %v424_v32 = vrot.slane %v360_v13, %v423_v12  ;;  %v419_v33 = vrot.slane %v357_v14, %v418_v27 }
 0x136   :  { %v426_v47 = vsel %vm425_vm1, %v424_v32, %v419_v33 }
 0x137   :  { %v369_v6 = vpop.xlane.xlu0 %368  ;;  %v363_v9 = vpop.xlane.xlu1 %362 }
 0x138   :  { %v431_v17 = vrot.slane %v363_v9, %v430_v28  ;;  %v444_v36 = vrot.slane %v369_v6, %v418_v27 }
 0x13a   :  { %v433_v50 = vsel %vm432_vm2, %v431_v17, %v426_v47 }
 0x13b   :  { %v372_v11 = vpop.xlane.xlu0 %371  ;;  %v366_v30 = vpop.xlane.xlu1 %365 }
 0x13c   :  { %v448_v34 = vrot.slane %v372_v11, %v423_v12  ;;  %v438_v45 = vrot.slane %v366_v30, %v437_v29 }
 0x13e   :  { %v449_v48 = vsel %vm425_vm1, %v448_v34, %v444_v36  ;;  %v440_v18 = vsel %vm439_vm3, %v438_v45, %v433_v50 }
 0x13f   :  { %v375_v31 = vpop.xlane.xlu0 %374 }
 0x140   :  { %v453_v35 = vrot.slane %v375_v31, %v430_v28 }
 0x142   :  { %v454_v53 = vsel %vm432_vm2, %v453_v35, %v449_v48 }
 0x143   :  { %v378_v46 = vpop.xlane.xlu0 %377 }
 0x144   :  { %v458_v49 = vrot.slane %v378_v46, %v437_v29 }
 0x146   :  { %v459_v54 = vsel %vm439_vm3, %v458_v49, %v454_v53 }
 0x147   :  { %v461_v38 = vsel %vm460_vm4, %v459_v54, %v440_v18 }
 0x148   :  { %756 = vmatmul.mubr.msk.f32.vlgmr.msra.gmra.mxu1 %vm462_vm5, %v461_v38 }
 0x149   :  { %759 = vmatpush3.msra.mxu1 %v382_v37  ;;  %766 = vmatprep.mubr.msk.f32.mxu1 %vm862_vm0, %v861_v1 }
 0x14a   :  { %760 = vmatprep.subr.mxu1 %v861_v1 }
 0x14b   :  { %761 = vmatpush3.msra.mxu1 %v381_v39 }
 0x14c   :  { %762 = vmatprep.subr.mxu1 %v861_v1 }
 0x14d   :  { %763 = vmatpush3.msra.mxu1 %v380_v40 }
 0x14e   :  { %764 = vmatprep.subr.mxu1 %v861_v1 }
 0x14f   :  { %765 = vmatpush3.msra.mxu1 %v379_v41 }
 0x150   :  { %767 = vmatmul.mubr.msk.f32.vlgmr.msra.gmra.mxu1 %vm462_vm5, %v405_v42 }
 0x208   :  { %v531_v59 = vpop.f32.mrf.mxu1 }
 0x20a   :  { %v757_v60 = vpop.f32.mrf.mxu1 }
 0x210   :  { %v604_v52 = vpop.f32.mrf.mxu1 }
 0x211   :  { %v605_v62 = vadd.f32 %v604_v52, %v531_v59 }
 0x212   :  { %v768_v63 = vpop.f32.mrf.mxu1 }
 0x213   :  { %v612_v0 = vadd.f32 %v718_v61, %v605_v62 }
 0x215   :  { %v613_v43 = vmax.f32 %v612_v0, 0.0 }
 0x217   :  { %802 = vmatmul.mubr.f32.vlgmr.msra.gmra.mxu0 %v613_v43 }
 0x2d7   :  { %v684_v2 = vpop.f32.mrf.mxu0 }
 0x2d8   :  { %v685_v3 = vadd.f32 %v719_v44, %v684_v2 }
 0x2d9   :  { %v803_v4 = vpop.f32.mrf.mxu0 }
 0x2da   :  { %688 = vst [vmem:[#allocation5] sm:$0x3] %v685_v3 }
 0x2db   :  { %844 = shalt.err (!%p841_p9)
}
 0x2dc   :  { %698 = dma.vmem_to_hbm [thread:$0]  %s696_s30, 32, %s1017_s4, [#allocation4]  }
 0x2dd   :  { %855 = dma.done.wait [#allocation4], 32  }
 0x2de   :  { %856 = vsyncadd [#allocation4], 4294967264 }
 0x2df   :  { %702 = vsyncpa [#allocation3], 1 }
 0x2e0   :  { %703 = vsyncpa [#allocation4], 1 }

</bundles_post_ra>
